<compile_context>
chip_gen: v5e
topology: v5e:2x2
jax: 0.10.0
libtpu: 0.0.40
codegen_flags: <defaults>
</compile_context>

<pallas_src>
import functools

import jax
import jax.numpy as jnp
from jax.experimental import pallas as pl
from jax.experimental.pallas import tpu as pltpu


def _round_up(x, m):
    return (x + m - 1) // m * m


def _reward_criterion_kernel(inp_ref, seq_ref, rew_ref, out_ref, *, tb, b_actual):
    x = inp_ref[...].astype(jnp.float32)          # (TB, T) log-probs
    r = rew_ref[...].astype(jnp.float32)          # (TB, T) rewards
    s = seq_ref[...]                              # (TB, T) token ids

    # Shifted mask, built entirely in-kernel:
    #   mask[:, 0] = 1 ;  mask[:, t] = (seq[:, t-1] > 0)  for t >= 1
    # pltpu.roll wraps around; the wrapped element at column 0 is overridden by
    # the `col == 0` branch, reproducing torch.cat([ones, mask[:, :-1]], 1).
    col = jax.lax.broadcasted_iota(jnp.int32, s.shape, 1)
    s_shift = pltpu.roll(s, shift=1, axis=1)
    keep_col = (col == 0) | (s_shift > 0)

    # Drop rows past the real batch (partial last block / padding rows).
    row = pl.program_id(0) * tb + jax.lax.broadcasted_iota(jnp.int32, s.shape, 0)
    keep = keep_col & (row < b_actual)

    # Select (not multiply-by-float-mask) so garbage data in a partial block
    # can never leak NaN/Inf into the sums.
    num = -jnp.sum(jnp.where(keep, x * r, jnp.float32(0.0)))
    den = jnp.sum(keep.astype(jnp.float32))

    # Lane-dense (unmasked) 128-wide store: lane 0 = num, lane 1 = den.
    lane = jax.lax.broadcasted_iota(jnp.int32, out_ref.shape, 2)
    out_ref[...] = jnp.where(lane == 0, num,
                             jnp.where(lane == 1, den, jnp.float32(0.0)))


def reward_criterion(inp, seq, reward, *, tb=None,
                     target_tile_bytes=8 * 1024 * 1024):
    """inp: (B, T) float, seq: (B, T) int, reward: (B, T) float -> scalar f32."""
    B, T = inp.shape

    # seq is only used for (seq > 0); keep narrow integer dtypes as-is to save
    # HBM bandwidth, only widen/convert when we must.
    if (jnp.issubdtype(seq.dtype, jnp.floating)
            or jnp.dtype(seq.dtype).itemsize > 4):
        seq = seq.astype(jnp.int32)

    itemsizes = [jnp.dtype(a.dtype).itemsize for a in (inp, reward, seq)]
    bytes_per_row = T * sum(itemsizes)
    # Sublane alignment: 8 rows for 32-bit, 16 for 16-bit, 32 for 8-bit blocks.
    sub = max(8 * max(1, 4 // i) for i in itemsizes)

    if tb is None:
        tb = (target_tile_bytes // max(bytes_per_row, 1)) // sub * sub
        tb = max(sub, tb)
        # Prefer >= 2 grid steps when B allows it, so the "parallel" grid axis
        # can occupy both TensorCores on v7x.
        if tb >= B and B > sub:
            tb = _round_up(pl.cdiv(B, 2), sub)
    tb = max(sub, _round_up(min(tb, _round_up(B, sub)), sub))

    num_tiles = pl.cdiv(B, tb)
    tile_bytes = tb * bytes_per_row
    # Double-buffered inputs + slack; explicit so v5e's 16 MiB scoped default
    # doesn't reject larger tiles, and still far under v7x's 64 MiB physical.
    vmem_limit = min(100 * 1024 * 1024,
                     max(32 * 1024 * 1024, 2 * tile_bytes + 8 * 1024 * 1024))

    kernel = functools.partial(_reward_criterion_kernel, tb=tb, b_actual=B)

    cost = pl.CostEstimate(
        flops=5 * B * T,
        transcendentals=0,
        bytes_accessed=int(B * bytes_per_row + num_tiles * 128 * 4),
    )

    partials = pl.pallas_call(
        kernel,
        out_shape=jax.ShapeDtypeStruct((num_tiles, 1, 128), jnp.float32),
        grid=(num_tiles,),
        in_specs=[
            pl.BlockSpec((tb, T), lambda i: (i, 0)),
            pl.BlockSpec((tb, T), lambda i: (i, 0)),
            pl.BlockSpec((tb, T), lambda i: (i, 0)),
        ],
        out_specs=pl.BlockSpec((1, 1, 128), lambda i: (i, 0, 0)),
        compiler_params=pltpu.CompilerParams(
            dimension_semantics=("parallel",),
            vmem_limit_bytes=int(vmem_limit),
        ),
        cost_estimate=cost,
    )(inp, seq, reward)

    num = jnp.sum(partials[:, 0, 0])
    den = jnp.sum(partials[:, 0, 1])
    return num / den


def _reference(inp, seq, reward):
    # Pure-JAX reference mirroring the PyTorch forward.
    mask = (seq > 0).astype(jnp.float32)
    mask = jnp.concatenate(
        [jnp.ones((mask.shape[0], 1), jnp.float32), mask[:, :-1]], axis=1)
    out = -inp.astype(jnp.float32) * reward.astype(jnp.float32) * mask
    return jnp.sum(out) / jnp.sum(mask)


if __name__ == "__main__":
    # Small shape consistent with the module (batch of sequences).
    B, T = 2, 8
    k1, k2, k3 = jax.random.split(jax.random.PRNGKey(0), 3)
    inp = -jax.random.uniform(k1, (B, T), jnp.float32, minval=0.1, maxval=3.0)
    reward = jax.random.normal(k2, (B, T), jnp.float32)
    seq = jax.random.randint(k3, (B, T), minval=0, maxval=5).astype(jnp.int32)
    # Force some trailing padding so the shifted mask matters.
    seq = seq.at[0, T - 2:].set(0)
    seq = seq.at[1, T - 3:].set(0)

    out = jax.block_until_ready(reward_criterion(inp, seq, reward))
    ref = _reference(inp, seq, reward)
    assert jnp.allclose(out, ref, rtol=1e-5, atol=1e-5), (out, ref)

    # Larger, non-aligned case: exercises multi-tile grid, partial last block
    # (no wrapper padding), and the per-tile partial accumulation.
    B2, T2 = 20, 160
    k4, k5, k6 = jax.random.split(jax.random.PRNGKey(1), 3)
    inp2 = -jax.random.uniform(k4, (B2, T2), jnp.float32, minval=0.1, maxval=3.0)
    reward2 = jax.random.normal(k5, (B2, T2), jnp.float32)
    seq2 = jax.random.randint(k6, (B2, T2), minval=0, maxval=5).astype(jnp.int32)

    # (a) explicit small tile -> 3 grid steps, last one partial.
    out2 = jax.block_until_ready(reward_criterion(inp2, seq2, reward2, tb=8))
    ref2 = _reference(inp2, seq2, reward2)
    assert jnp.allclose(out2, ref2, rtol=1e-5, atol=1e-5), (out2, ref2)

    # (b) heuristic tile -> 2 grid steps (v7x dual-TC friendly), partial block.
    out3 = jax.block_until_ready(reward_criterion(inp2, seq2, reward2))
    assert jnp.allclose(out3, ref2, rtol=1e-5, atol=1e-5), (out3, ref2)

    # (c) bf16 activations: exercises the 16-row sublane alignment path.
    out4 = jax.block_until_ready(
        reward_criterion(inp2.astype(jnp.bfloat16),
                         seq2,
                         reward2.astype(jnp.bfloat16)))
    ref4 = _reference(inp2.astype(jnp.bfloat16), seq2,
                      reward2.astype(jnp.bfloat16))
    assert jnp.allclose(out4, ref4, rtol=1e-3, atol=1e-3), (out4, ref4)

    print("KERNEL_OK")
</pallas_src>

<mosaic_0001>
module attributes {stable_mosaic.version = 11 : i64} {
  func.func @_reward_criterion_kernel(%arg0: i32, %arg1: memref<8x8xf32, #tpu.memory_space<vmem>>, %arg2: memref<8x8xi32, #tpu.memory_space<vmem>>, %arg3: memref<8x8xf32, #tpu.memory_space<vmem>>, %arg4: memref<1x1x128xf32, #tpu.memory_space<vmem>>) attributes {dimension_semantics = [#tpu.dimension_semantics<parallel>], iteration_bounds = array<i64: 1>, scalar_prefetch = 0 : i64, scratch_operands = 0 : i64, tpu.core_type = #tpu.core_type<tc>, window_params = [{transform_indices = @transform_0, window_bounds = array<i64: 8, 8>}, {transform_indices = @transform_1, window_bounds = array<i64: 8, 8>}, {transform_indices = @transform_2, window_bounds = array<i64: 8, 8>}, {transform_indices = @transform_3, window_bounds = array<i64: 1, 1, 128>}]} {
    %c0 = arith.constant 0 : index
    %c0_0 = arith.constant 0 : index
    %0 = vector.load %arg1[%c0, %c0_0] : memref<8x8xf32, #tpu.memory_space<vmem>>, vector<8x8xf32>
    %c0_1 = arith.constant 0 : index
    %c0_2 = arith.constant 0 : index
    %1 = vector.load %arg3[%c0_1, %c0_2] : memref<8x8xf32, #tpu.memory_space<vmem>>, vector<8x8xf32>
    %c0_3 = arith.constant 0 : index
    %c0_4 = arith.constant 0 : index
    %2 = vector.load %arg2[%c0_3, %c0_4] : memref<8x8xi32, #tpu.memory_space<vmem>>, vector<8x8xi32>
    %3 = tpu.iota {dimensions = array<i32: 1>} : vector<8x8xi32>
    %c1_i32 = arith.constant 1 : i32
    %4 = tpu.dynamic_rotate %2 by %c1_i32 dim 1 : vector<8x8xi32>, i32 -> vector<8x8xi32>
    %c0_i32 = arith.constant 0 : i32
    %5 = vector.broadcast %c0_i32 : i32 to vector<8x8xi32>
    %6 = arith.cmpi eq, %3, %5 : vector<8x8xi32>
    %c0_i32_5 = arith.constant 0 : i32
    %7 = vector.broadcast %c0_i32_5 : i32 to vector<8x8xi32>
    %8 = arith.cmpi sgt, %4, %7 : vector<8x8xi32>
    %9 = arith.ori %6, %8 : vector<8x8xi1>
    %c8_i32 = arith.constant 8 : i32
    %10 = arith.muli %arg0, %c8_i32 : i32
    %11 = tpu.iota {dimensions = array<i32: 0>} : vector<8x8xi32>
    %12 = vector.broadcast %10 : i32 to vector<8x8xi32>
    %13 = arith.addi %12, %11 : vector<8x8xi32>
    %c2_i32 = arith.constant 2 : i32
    %14 = vector.broadcast %c2_i32 : i32 to vector<8x8xi32>
    %15 = arith.cmpi slt, %13, %14 : vector<8x8xi32>
    %16 = arith.andi %9, %15 : vector<8x8xi1>
    %17 = arith.mulf %0, %1 : vector<8x8xf32>
    %cst = arith.constant 0.000000e+00 : f32
    %18 = vector.broadcast %cst : f32 to vector<8x8xf32>
    %19 = arith.select %16, %17, %18 : vector<8x8xi1>, vector<8x8xf32>
    %20 = vector.shape_cast %19 : vector<8x8xf32> to vector<1x8x8xf32>
    %cst_6 = arith.constant dense<0.000000e+00> : vector<1xf32>
    %21 = vector.multi_reduction <add>, %20, %cst_6 [1, 2] : vector<1x8x8xf32> to vector<1xf32>
    %22 = vector.shape_cast %21 : vector<1xf32> to vector<1x1x1xf32>
    %23 = vector.extract %22[0, 0, 0] : f32 from vector<1x1x1xf32>
    %cst_7 = arith.constant 0.000000e+00 : f32
    %24 = arith.subf %cst_7, %23 : f32
    %25 = arith.extui %16 : vector<8x8xi1> to vector<8x8xi32>
    %26 = arith.sitofp %25 : vector<8x8xi32> to vector<8x8xf32>
    %27 = vector.shape_cast %26 : vector<8x8xf32> to vector<1x8x8xf32>
    %cst_8 = arith.constant dense<0.000000e+00> : vector<1xf32>
    %28 = vector.multi_reduction <add>, %27, %cst_8 [1, 2] : vector<1x8x8xf32> to vector<1xf32>
    %29 = vector.shape_cast %28 : vector<1xf32> to vector<1x1x1xf32>
    %30 = vector.extract %29[0, 0, 0] : f32 from vector<1x1x1xf32>
    %31 = tpu.iota {dimensions = array<i32: 2>} : vector<1x1x128xi32>
    %c0_i32_9 = arith.constant 0 : i32
    %32 = vector.broadcast %c0_i32_9 : i32 to vector<1x1x128xi32>
    %33 = arith.cmpi eq, %31, %32 : vector<1x1x128xi32>
    %c1_i32_10 = arith.constant 1 : i32
    %34 = vector.broadcast %c1_i32_10 : i32 to vector<1x1x128xi32>
    %35 = arith.cmpi eq, %31, %34 : vector<1x1x128xi32>
    %cst_11 = arith.constant 0.000000e+00 : f32
    %36 = vector.broadcast %30 : f32 to vector<1x1x128xf32>
    %37 = vector.broadcast %cst_11 : f32 to vector<1x1x128xf32>
    %38 = arith.select %35, %36, %37 : vector<1x1x128xi1>, vector<1x1x128xf32>
    %39 = vector.broadcast %24 : f32 to vector<1x1x128xf32>
    %40 = arith.select %33, %39, %38 : vector<1x1x128xi1>, vector<1x1x128xf32>
    %c0_12 = arith.constant 0 : index
    %c0_13 = arith.constant 0 : index
    %c0_14 = arith.constant 0 : index
    %41 = vector.load %arg4[%c0_12, %c0_13, %c0_14] : memref<1x1x128xf32, #tpu.memory_space<vmem>>, vector<1x1x128xf32>
    tpu.vector_store %arg4[%c0_12, %c0_13, %c0_14], %40 {strides = array<i32>} : memref<1x1x128xf32, #tpu.memory_space<vmem>>, vector<1x1x128xf32>,
    return
  }
  func.func @transform_0(%arg0: i32) -> (i32, i32) {
    %c0_i32 = arith.constant 0 : i32
    %c0_i32_0 = arith.constant 0 : i32
    return %arg0, %c0_i32 : i32, i32
  }
  func.func @transform_1(%arg0: i32) -> (i32, i32) {
    %c0_i32 = arith.constant 0 : i32
    %c0_i32_0 = arith.constant 0 : i32
    return %arg0, %c0_i32 : i32, i32
  }
  func.func @transform_2(%arg0: i32) -> (i32, i32) {
    %c0_i32 = arith.constant 0 : i32
    %c0_i32_0 = arith.constant 0 : i32
    return %arg0, %c0_i32 : i32, i32
  }
  func.func @transform_3(%arg0: i32) -> (i32, i32, i32) {
    %c0_i32 = arith.constant 0 : i32
    %c0_i32_0 = arith.constant 0 : i32
    %c0_i32_1 = arith.constant 0 : i32
    return %arg0, %c0_i32, %c0_i32_0 : i32, i32, i32
  }
}

</mosaic_0001>

<bundles_post_ra>
// kernel: tpu_custom_call.1
= control target key start
LH: loop header
LB: loop body
LE: loop exit
PB: predicated region body
PF: predicated region fallthrough
CT: control target
= control target key end

     0   :  { %8 = vsyncpa [#allocation3], 0  ;;  %s299_s0 = inlined_call_operand.hbm [shape: f32[2,8], index: 0, kind: input, shape index: {}]   ;;  %s300_s1 = inlined_call_operand.hbm [shape: s32[2,8], index: 1, kind: input, shape index: {}]   ;;  %s301_s2 = inlined_call_operand.hbm [shape: f32[2,8], index: 2, kind: input, shape index: {}]   ;;  %s302_s3 = inlined_call_operand.hbm [shape: f32[1,1,128], index: 3, kind: output, shape index: {}]  }
   0x1   :  { %9 = vsyncpa [#allocation6], 0 }
   0x2   :  { %10 = vsyncpa [#allocation4], 0 }
   0x3   :  { %14 = vsyncadd [#allocation3], 96  ;;  %s15_s14 = sshll.u32 %s299_s0, 4  ;;  %s255_s15 = smov [#allocation2]   ;;  %s16_s14 = int_to_ptr.hbm [resolvable:$true] %s15_s14 }
   0x4   :  { %s17_s16 = sshll.u32 %s255_s15, 4  ;;  %s256_s17 = smov 32   ;;  %s18_s16 = int_to_ptr.vmem [resolvable:$true] %s17_s16 }
   0x5   :  { %s257_s18 = smov 2  }
   0x6   :  { %23 = dma.hbm_to_vmem [thread:$0]  %s16_s14, 32, %s18_s16, [#allocation3], %s256_s17, %s256_s17, %s257_s18  }
   0x7   :  { %27 = vsyncadd [#allocation6], 96  ;;  %s28_s21 = sshll.u32 %s300_s1, 4  ;;  %s258_s22 = smov [#allocation5]   ;;  %s29_s21 = int_to_ptr.hbm [resolvable:$true] %s28_s21 }
   0x8   :  { %s30_s23 = sshll.u32 %s258_s22, 4  ;;  %s31_s23 = int_to_ptr.vmem [resolvable:$true] %s30_s23 }
   0x9   :  { %36 = dma.hbm_to_vmem [thread:$0]  %s29_s21, 32, %s31_s23, [#allocation6], %s256_s17, %s256_s17, %s257_s18  }
   0xa   :  { %40 = vsyncadd [#allocation6], 96  ;;  %s41_s25 = sshll.u32 %s301_s2, 4  ;;  %s259_s26 = smov [#allocation7]   ;;  %s42_s25 = int_to_ptr.hbm [resolvable:$true] %s41_s25 }
   0xb   :  { %s43_s27 = sshll.u32 %s259_s26, 4  ;;  %s44_s27 = int_to_ptr.vmem [resolvable:$true] %s43_s27 }
   0xc   :  { %49 = dma.hbm_to_vmem [thread:$0]  %s42_s25, 32, %s44_s27, [#allocation6], %s256_s17, %s256_s17, %s257_s18  }
   0xd   :  { %249 = dma.done.wait [#allocation3], 128  }
   0xe   :  { %250 = vsyncadd [#allocation3], 4294967168 }
   0xf   :  { %251 = dma.done.wait [#allocation6], 256  }
  0x10   :  { %252 = vsyncadd [#allocation6], 4294967040  ;;  %v64_v0 = vld [vmem:[#allocation5] sm:$0xff]  ;;  %s260_s1 = smov 8   ;;  %vm67_vm0 = vcmask 1047616   ;;  %v261_v5 = vmov 0   ;;  %v65_v7 = vlaneseq }
  0x11   :  { %68 = vrot.lane.b32.xlu0 %v64_v0, %s260_s1  ;;  %s262_s2 = smov 121   ;;  %v62_v10 = vld [vmem:[#allocation2] sm:$0xff]  ;;  %v63_v11 = vld [vmem:[#allocation7] sm:$0xff]  ;;  %vm90_vm6 = vcmask 64512   ;;  %v263_v14 = vmov 0.0   ;;  %s264_s28 = smov [#allocation8]  }
  0x12   :  { %v66_v8 = vand.u32 127, %v65_v7  ;;  %v83_v9 = vshrl.u32 %v65_v7, 7  ;;  %v88_v13 = vmul.f32 %v63_v11, %v62_v10  ;;  %s125_s29 = sshll.u32 %s264_s28, 4  ;;  %s127_s6 = sshll.u32 %s302_s3, 4  ;;  %s126_s29 = int_to_ptr.vmem [resolvable:$true] %s125_s29  ;;  %s128_s6 = int_to_ptr.hbm [resolvable:$true] %s127_s6 }
  0x14   :  { %vm74_vm2 = vcmp.eq.s32.totalorder %v66_v8, 0  ;;  %vm86_vm3 = vcmp.lt.s32.totalorder %v83_v9, 2  ;;  %vm114_vm8 = vcmp.eq.s32.totalorder %v66_v8, 1 }
  0x83   :  { %v69_v1 = vpop.permute.xlu0 %68 }
  0x84   :  { %v70_v2 = vsel %vm67_vm0, %v69_v1, %v64_v0 }
  0x85   :  { %71 = vrot.lane.b32.xlu0 %v70_v2, %s260_s1 }
  0xf7   :  { %v72_v3 = vpop.permute.xlu0 %71 }
  0xf8   :  { %v73_v4 = vsel %vm67_vm0, %v72_v3, %v64_v0 }
  0xf9   :  { %vm75_vm1 = vcmp.gt.s32.totalorder %v73_v4, 0 }
  0xfa   :  { %v76_v6 = vsel %vm75_vm1, 1, %v261_v5 }
  0xfb   :  { %77 = vrot.lane.b32.xlu1 %v76_v6, %s262_s2 }
 0x16d   :  { %v78_v12 = vpop.permute.xlu1 %77 }
 0x16e   :  { %vm79_vm4 = vcmp.ne.s32.totalorder %v78_v12, 0 }
 0x16f   :  { %vm80_vm5 = vmor %vm74_vm2, %vm79_vm4 }
 0x170   :  { %vm87_vm7 = vmand %vm80_vm5, %vm86_vm3 }
 0x171   :  { %v138_v15 = vsel %vm87_vm7, 1.0, %v263_v14  ;;  %v89_v16 = vsel %vm87_vm7, %v88_v13, 0.0 }
 0x172   :  { %v104_v17 = vsel %vm90_vm6, %v138_v15, 0.0  ;;  %v91_v18 = vsel %vm90_vm6, %v89_v16, 0.0 }
 0x173   :  { %105 = vadd.xlane.f32.xlu2 %v104_v17  ;;  %92 = vadd.xlane.f32.xlu1 %v91_v18 }
 0x1e6   :  { %v106_v19 = vpop.xlane.xlu2 %105  ;;  %v93_v20 = vpop.xlane.xlu1 %92 }
 0x1e7   :  { %v107_v21 = vrot.slane %v106_v19, 4  ;;  %v94_v22 = vrot.slane %v93_v20, 4 }
 0x1e9   :  { %v108_v23 = vadd.f32 %v107_v21, %v106_v19  ;;  %v95_v24 = vadd.f32 %v94_v22, %v93_v20 }
 0x1eb   :  { %v109_v25 = vrot.slane %v108_v23, 2  ;;  %v96_v26 = vrot.slane %v95_v24, 2 }
 0x1ed   :  { %v110_v27 = vadd.f32 %v109_v25, %v108_v23  ;;  %v97_v28 = vadd.f32 %v96_v26, %v95_v24 }
 0x1ef   :  { %v98_v29 = vrot.slane %v97_v28, 1  ;;  %v111_v30 = vrot.slane %v110_v27, 1 }
 0x1f1   :  { %v99_v31 = vadd.f32 %v98_v29, %v97_v28  ;;  %v112_v32 = vadd.f32 %v111_v30, %v110_v27 }
 0x1f3   :  { %139 = vpush %v99_v31 }
 0x1f4   :  { %141 = vpush %v112_v32 }
 0x224   :  { %s140_s30 = spop %139 }
 0x225   :  { %s101_s7 = ssub.f32 0.0, %s140_s30  ;;  %s142_s8 = spop %141 }
 0x226   :  { %v115_v33 = vstv %s142_s8 }
 0x227   :  { %v117_v34 = vstv %s101_s7  ;;  %v116_v35 = vsel %vm114_vm8, %v115_v33, 0.0 }
 0x228   :  { %v118_v36 = vsel %vm74_vm2, %v117_v34, %v116_v35 }
 0x229   :  { %119 = vst [vmem:[#allocation8] sm:$0x1] %v118_v36 }
 0x22a   :  { %130 = dma.vmem_to_hbm [thread:$0]  %s126_s29, 16, %s128_s6, [#allocation4]  }
 0x22b   :  { %253 = dma.done.wait [#allocation4], 16  }
 0x22c   :  { %254 = vsyncadd [#allocation4], 4294967280 }
 0x22d   :  { %135 = vsyncpa [#allocation3], 1 }
 0x22e   :  { %136 = vsyncpa [#allocation6], 1 }
 0x22f   :  { %137 = vsyncpa [#allocation4], 1 }

</bundles_post_ra>
